<compile_context>
chip_gen: v6e
topology: v6e:2x2x1
jax: 0.10.0
libtpu: 0.0.40
codegen_flags: <defaults>
</compile_context>

<pallas_src>
import functools
import numpy as np

import jax
import jax.numpy as jnp
from jax.experimental import pallas as pl
from jax.experimental.pallas import tpu as pltpu


# ----------------------------------------------------------------------------
# Pallas kernel: one image per grid step.
# ----------------------------------------------------------------------------
def refine_head_kernel(pooled_ref, priors_ref,
                       gw_ref, gb_ref, qkw_ref, qkb_ref,
                       c1w_ref, c1b_ref, c2w_ref, c2b_ref,
                       h1w_ref, h1b_ref, h2w_ref, h2b_ref,
                       pred_ref, attn_ref,
                       *, num_groups, group_dim):
    f32 = jnp.float32
    G, d = num_groups, group_dim

    x = pooled_ref[0]                                   # (Np, Sp*C), bf16

    # gather_fc: grouped Conv1d(kernel=C) == one block-diagonal bf16 matmul
    # with f32 accumulation.
    feat = jnp.dot(x, gw_ref[...], preferred_element_type=f32) + gb_ref[...]   # (Np, H)
    np_ = feat.shape[0]

    # Fused q|k projection: one lane-dense matmul, then cheap static lane
    # slices to lay k (and v = feat) out per segment group.
    qk = jnp.dot(feat, qkw_ref[...], preferred_element_type=f32) + qkb_ref[...]   # (Np, d+H)
    q = qk[:, :d]                                                                  # (Np, d)
    q3 = jnp.broadcast_to(q[None], (G, np_, d))                                    # (G, Np, d)
    k3 = jnp.stack([qk[:, d + g * d: d + (g + 1) * d] for g in range(G)], axis=0)  # (G, Np, d)
    v3 = jnp.stack([feat[:, g * d:(g + 1) * d] for g in range(G)], axis=0)         # (G, Np, d)

    # All G segment-attention blocks: one batched NT einsum, one softmax, one
    # batched NN einsum (flash-attn operand pattern), one store.
    s3 = jnp.einsum("gnd,gmd->gnm", q3, k3,
                    preferred_element_type=f32) * (float(d) ** -0.5)               # (G, Np, Np)
    e = jnp.exp(s3 - jnp.max(s3, axis=-1, keepdims=True))
    attn3 = e / jnp.sum(e, axis=-1, keepdims=True)       # exact: rows sum to 1
    attn_ref[0] = attn3                                   # final (B, G, Np, Np) layout

    ctx3 = jnp.einsum("gnm,gmd->gnd", attn3, v3, preferred_element_type=f32)       # (G, Np, d)
    ctx = jnp.concatenate([ctx3[g] for g in range(G)], axis=-1)                    # (Np, H)

    # channel_fc: Linear -> ReLU -> Linear, residual into feat.
    h = jnp.maximum(jnp.dot(ctx, c1w_ref[...], preferred_element_type=f32)
                    + c1b_ref[...], 0.0)
    feat = feat + jnp.dot(h, c2w_ref[...], preferred_element_type=f32) + c2b_ref[...]

    # Fused cls + reg heads: one wide first layer, one block-diagonal second layer.
    hh = jnp.maximum(jnp.dot(feat, h1w_ref[...], preferred_element_type=f32)
                     + h1b_ref[...], 0.0)                                           # (Np, 2H)
    out = jnp.dot(hh, h2w_ref[...], preferred_element_type=f32) + h2b_ref[...]      # (Np, Dp)

    # predictions[:, :2] = cls_logits ; predictions[:, 2:] = priors[:, 2:] + reg
    priors = priors_ref[0]                                                           # (Np, Dp)
    col = jax.lax.broadcasted_iota(jnp.int32, priors.shape, 1)
    pred_ref[0] = out + jnp.where(col >= 2, priors, 0.0)


# ----------------------------------------------------------------------------
# Wrapper: init-time weight fusion + pallas_call.
# ----------------------------------------------------------------------------
FUSED_WEIGHT_NAMES = ("gather_w", "gather_b", "qk_w", "qk_b",
                      "cf1_w", "cf1_b", "cf2_w", "cf2_b",
                      "head1_w", "head1_b", "head2_w", "head2_b")


def _const_map(ndim, b):
    return (0,) * ndim


def prepare_fused_params(params, *, num_groups, fc_hidden_dim, n_offsets):
    """One-time (init-time, NOT per-forward) weight fusion / re-layout."""
    H, G = fc_hidden_dim, num_groups
    assert H % G == 0
    pd = n_offsets + 4
    f32 = jnp.float32
    # block-diagonal second head layer: [cls hidden | reg hidden] -> [cls | reg]
    h2 = jnp.zeros((2 * H, pd), f32)
    h2 = h2.at[:H, :2].set(params["cls2_w"])
    h2 = h2.at[H:, 2:].set(params["reg2_w"])
    return {
        # bf16 operands for the dominant (pooled x gather_w) MXU matmul
        "gather_w": params["gather_w_flat"].astype(jnp.bfloat16),
        "gather_b": params["gather_b"].astype(f32),
        # fused q|k projection (one lane-dense matmul inside the kernel)
        "qk_w": jnp.concatenate([params["q_w"], params["k_w"]], axis=1).astype(f32),
        "qk_b": jnp.concatenate([params["q_b"], params["k_b"]], axis=1).astype(f32),
        "cf1_w": params["cf1_w"].astype(f32), "cf1_b": params["cf1_b"].astype(f32),
        "cf2_w": params["cf2_w"].astype(f32), "cf2_b": params["cf2_b"].astype(f32),
        # fused cls|reg first layer, block-diagonal second layer
        "head1_w": jnp.concatenate([params["cls1_w"], params["reg1_w"]], axis=1).astype(f32),
        "head1_b": jnp.concatenate([params["cls1_b"], params["reg1_b"]], axis=1).astype(f32),
        "head2_w": h2,
        "head2_b": jnp.concatenate([params["cls2_b"], params["reg2_b"]], axis=1).astype(f32),
    }


def run_refine_head(pooled, priors, fused, *, num_groups, fc_hidden_dim):
    B, Np, Dfeat = pooled.shape
    prior_dim = priors.shape[-1]
    G = num_groups
    d = fc_hidden_dim // G

    # bf16 pooled features: halves the only large HBM->VMEM DMA; accumulation
    # inside the kernel stays float32.
    pooled_bf = pooled.astype(jnp.bfloat16)
    priors_f = priors.astype(jnp.float32)
    weights = [fused[n] for n in FUSED_WEIGHT_NAMES]

    kernel = functools.partial(refine_head_kernel, num_groups=G, group_dim=d)

    in_specs = [pl.BlockSpec((1, Np, Dfeat), lambda b: (b, 0, 0)),
                pl.BlockSpec((1, Np, prior_dim), lambda b: (b, 0, 0))]
    in_specs += [pl.BlockSpec(w.shape, functools.partial(_const_map, w.ndim))
                 for w in weights]

    out_shape = (jax.ShapeDtypeStruct((B, Np, prior_dim), jnp.float32),
                 jax.ShapeDtypeStruct((B, G, Np, Np), jnp.float32))
    out_specs = (pl.BlockSpec((1, Np, prior_dim), lambda b: (b, 0, 0)),
                 pl.BlockSpec((1, G, Np, Np), lambda b: (b, 0, 0, 0)))

    # grid over the batch: pipelines the pooled DMA on v5e/v6e, megacore-shards
    # on v7x, and keeps per-step blocks far inside v7x's 64 MiB VMEM.
    preds, attn = pl.pallas_call(
        kernel,
        grid=(B,),
        in_specs=in_specs,
        out_specs=out_specs,
        out_shape=out_shape,
        compiler_params=pltpu.CompilerParams(
            dimension_semantics=("parallel",),
            vmem_limit_bytes=32 * 1024 * 1024),
    )(pooled_bf, priors_f, *weights)
    return preds, attn


# ----------------------------------------------------------------------------
# JAX glue: bilinear multi-level sampling.
# TODO(synk): the grid_sample-style 4-corner gather over FPN maps stays in
# plain JAX; a data-dependent gather at these tiny shapes has no clean
# Pallas-TPU fit.
# ----------------------------------------------------------------------------
def bilinear_grid_sample(value, grid):
    # value: [B, C, H, W]; grid: [B, N, P, 2] with (x, y) in [-1, 1]
    # matches torch.grid_sample(mode='bilinear', padding_mode='zeros',
    #                           align_corners=True)
    B, C, H, W = value.shape
    x = (grid[..., 0] + 1.0) * 0.5 * (W - 1)
    y = (grid[..., 1] + 1.0) * 0.5 * (H - 1)
    x0 = jnp.floor(x)
    y0 = jnp.floor(y)
    x1 = x0 + 1.0
    y1 = y0 + 1.0
    wx1 = x - x0
    wx0 = 1.0 - wx1
    wy1 = y - y0
    wy0 = 1.0 - wy1

    def corner(ix, iy, w):
        valid = ((ix >= 0) & (ix <= W - 1) & (iy >= 0) & (iy <= H - 1))
        ixc = jnp.clip(ix, 0, W - 1).astype(jnp.int32)
        iyc = jnp.clip(iy, 0, H - 1).astype(jnp.int32)
        g = jax.vmap(lambda v, yy, xx: v[:, yy, xx])(value, iyc, ixc)  # [B,C,N,P]
        return g * (valid.astype(value.dtype) * w)[:, None, :, :]

    out = (corner(x0, y0, wx0 * wy0) + corner(x1, y0, wx1 * wy0)
           + corner(x0, y1, wx0 * wy1) + corner(x1, y1, wx1 * wy1))
    return jnp.transpose(out, (0, 2, 3, 1))                      # [B, N, P, C]


def sampling_3d(grid_xy01, z_weight, feats):
    g = grid_xy01 * 2.0 - 1.0
    out = 0.0
    for lvl, v in enumerate(feats):
        out = out + bilinear_grid_sample(v, g) * z_weight[..., lvl][..., None]
    return out                                                   # [B, N, P, C]


# ----------------------------------------------------------------------------
# Full CascadeRefineHead forward (eval, refine_layers=1).
# `fused` must come from prepare_fused_params (called once at init).
# ----------------------------------------------------------------------------
def cascade_refine_head_forward(x_feats, priors, buffers, fused, cfg):
    batch_features = list(x_feats)[::-1]                         # .reverse()
    B, Np, prior_dim = priors.shape

    # prior_feat_xs = priors[..., 4 + sample_x_indexs].flip(dims=[2])
    prior_feat_xs = priors[:, :, 4 + buffers["sample_x_indexs"]][:, :, ::-1]

    # z weighting over FPN levels (translate_to_linear_weight, tau=2)
    z_emb = buffers["z_embeddings"]                              # [Sp]
    Sp = int(z_emb.shape[0])
    levels = jnp.arange(cfg["n_fpn"], dtype=jnp.float32)
    l2 = -jnp.abs((z_emb[:, None] - levels[None, :]) ** 2 / 2.0)
    z_w = jax.nn.softmax(l2, axis=-1)                            # [Sp, L]
    z_w = jnp.broadcast_to(z_w[None, None], (B, Np, Sp, cfg["n_fpn"]))

    ys = jnp.broadcast_to(buffers["prior_feat_ys"][None, None], (B, Np, Sp))
    grid = jnp.stack([prior_feat_xs, ys], axis=-1)               # [B,Np,Sp,2] in [0,1]

    feat = sampling_3d(grid, z_w, batch_features)                # [B,Np,Sp,C]
    pooled = feat.reshape(B, Np, -1)                             # [B,Np,Sp*C]

    preds, attn = run_refine_head(pooled, priors, fused,
                                  num_groups=cfg["num_groups"],
                                  fc_hidden_dim=cfg["fc_hidden_dim"])
    return preds, attn


# ----------------------------------------------------------------------------
# Deterministic synthetic parameters (shapes from RefineHead.__init__).
# Linear/conv weights stored pre-transposed as [in, out]; biases as [1, out].
# ----------------------------------------------------------------------------
def make_params(key, *, num_points, sample_points, prior_feat_channels,
                fc_hidden_dim, num_groups, n_fpn, z_mean, z_std):
    n_strips = num_points - 1
    n_offsets = num_points
    H, G, Sp, C = fc_hidden_dim, num_groups, sample_points, prior_feat_channels
    Hg, Spg = H // G, Sp // G

    ks = jax.random.split(key, 24)
    nrm = lambda k, shape, std=0.05: (std * jax.random.normal(k, shape)).astype(jnp.float32)

    # buffers
    sx = (np.linspace(0.0, 1.0, Sp, dtype=np.float32)
          * np.float32(n_strips)).astype(np.int64)               # torch .long() truncation
    prior_feat_ys = (1.0 - sx.astype(np.float32) / n_strips)[::-1].copy()

    # gather_fc: Conv1d(Sp -> H, kernel=C, groups=G)  -> block-diagonal [Sp*C, H]
    gw = np.asarray(nrm(ks[0], (H, Spg, C)))
    gw_flat = np.zeros((Sp * C, H), np.float32)
    for g in range(G):
        blk = gw[g * Hg:(g + 1) * Hg].reshape(Hg, Spg * C).T
        gw_flat[g * Spg * C:(g + 1) * Spg * C, g * Hg:(g + 1) * Hg] = blk

    d = H // G
    params = {
        "sample_x_indexs": jnp.asarray(sx, jnp.int32),
        "prior_feat_ys": jnp.asarray(prior_feat_ys, jnp.float32),
        "z_embeddings": (z_mean + z_std * jax.random.normal(ks[1], (Sp,))).astype(jnp.float32),
        "gather_w_flat": jnp.asarray(gw_flat),
        "gather_b": nrm(ks[2], (1, H)),
        # MultiSegmentAttention
        "q_w": nrm(ks[3], (H, d)), "q_b": nrm(ks[4], (1, d)),
        "k_w": nrm(ks[5], (H, H)), "k_b": nrm(ks[6], (1, H)),
        # channel_fc: Linear(H,2H) ReLU Linear(2H,H)
        "cf1_w": nrm(ks[7], (H, 2 * H)), "cf1_b": nrm(ks[8], (1, 2 * H)),
        "cf2_w": nrm(ks[9], (2 * H, H)), "cf2_b": nrm(ks[10], (1, H)),
        # cls_modules (Linear+ReLU) + cls_layers (init std 0.001)
        "cls1_w": nrm(ks[11], (H, H)), "cls1_b": nrm(ks[12], (1, H)),
        "cls2_w": nrm(ks[13], (H, 2), 0.001), "cls2_b": nrm(ks[14], (1, 2), 0.001),
        # reg_modules (Linear+ReLU) + reg_layers (n_offsets + 2, init std 0.001)
        "reg1_w": nrm(ks[15], (H, H)), "reg1_b": nrm(ks[16], (1, H)),
        "reg2_w": nrm(ks[17], (H, n_offsets + 2), 0.001),
        "reg2_b": nrm(ks[18], (1, n_offsets + 2), 0.001),
    }
    return params


# ----------------------------------------------------------------------------
# Pure-JAX (float32) reference of the head math, with the un-fused parameters.
# ----------------------------------------------------------------------------
def head_reference(pooled, priors, p, *, num_groups, fc_hidden_dim):
    G, H = num_groups, fc_hidden_dim
    d = H // G
    B, Np, _ = pooled.shape
    feat = pooled @ p["gather_w_flat"] + p["gather_b"][0]
    q = feat @ p["q_w"] + p["q_b"][0]
    k = feat @ p["k_w"] + p["k_b"][0]
    k4 = k.reshape(B, Np, G, d).transpose(0, 2, 1, 3)
    v4 = feat.reshape(B, Np, G, d).transpose(0, 2, 1, 3)
    attn = jnp.einsum("bnd,bgmd->bgnm", q, k4) * (d ** -0.5)
    attn = jax.nn.softmax(attn, axis=-1)
    ctx = jnp.einsum("bgnm,bgmd->bngd", attn, v4).reshape(B, Np, H)
    h = jax.nn.relu(ctx @ p["cf1_w"] + p["cf1_b"][0])
    feat = feat + h @ p["cf2_w"] + p["cf2_b"][0]
    ch = jax.nn.relu(feat @ p["cls1_w"] + p["cls1_b"][0])
    cls_logits = ch @ p["cls2_w"] + p["cls2_b"][0]
    rh = jax.nn.relu(feat @ p["reg1_w"] + p["reg1_b"][0])
    reg = rh @ p["reg2_w"] + p["reg2_b"][0]
    preds = jnp.concatenate([cls_logits, priors[..., 2:] + reg], axis=-1)
    return preds, attn


if __name__ == "__main__":
    # small, consistent configuration
    B, Np = 2, 16
    num_points = 8            # -> n_offsets=8, prior row = 4 + 8 = 12
    sample_points = 8
    prior_feat_channels = 16
    fc_hidden_dim = 32
    num_groups = 4
    n_fpn = 3
    cfg = {"img_w": 800, "img_h": 320, "n_fpn": n_fpn,
           "num_groups": num_groups, "fc_hidden_dim": fc_hidden_dim}

    key = jax.random.PRNGKey(0)
    k_par, k_feat, k_pri = jax.random.split(key, 3)
    params = make_params(k_par, num_points=num_points, sample_points=sample_points,
                         prior_feat_channels=prior_feat_channels,
                         fc_hidden_dim=fc_hidden_dim, num_groups=num_groups,
                         n_fpn=n_fpn, z_mean=1.0, z_std=0.3)
    buffers = {k: params[k] for k in ("sample_x_indexs", "prior_feat_ys", "z_embeddings")}

    # weight fusion hoisted out of the forward: runs once at init, not per call
    fused = prepare_fused_params(params, num_groups=num_groups,
                                 fc_hidden_dim=fc_hidden_dim, n_offsets=num_points)

    # FPN feature maps, NCHW (highest resolution first, as fed to the module)
    fk = jax.random.split(k_feat, n_fpn)
    x_feats = tuple(
        jax.random.uniform(fk[i], (B, prior_feat_channels, 16 // (2 ** i), 16 // (2 ** i)),
                           dtype=jnp.float32)
        for i in range(n_fpn))

    # priors: [:, :, :2] cls scores, [:, :, 2:4] start/length, [:, :, 4:] x-coords in [0,1]
    priors = jax.random.uniform(k_pri, (B, Np, 4 + num_points), dtype=jnp.float32)

    fwd = jax.jit(functools.partial(cascade_refine_head_forward, cfg=cfg))
    preds, attn = fwd(x_feats, priors, buffers, fused)
    jax.block_until_ready((preds, attn))

    # correctness check against a pure-JAX float32 reference of the head math
    bf = list(x_feats)[::-1]
    pfx = priors[:, :, 4 + params["sample_x_indexs"]][:, :, ::-1]
    levels = jnp.arange(n_fpn, dtype=jnp.float32)
    zw = jax.nn.softmax(-jnp.abs((params["z_embeddings"][:, None] - levels[None]) ** 2 / 2.0), -1)
    zw = jnp.broadcast_to(zw[None, None], (B, Np, sample_points, n_fpn))
    ys = jnp.broadcast_to(params["prior_feat_ys"][None, None], (B, Np, sample_points))
    grid = jnp.stack([pfx, ys], axis=-1)
    pooled_ref = sampling_3d(grid, zw, bf).reshape(B, Np, -1)
    ref_preds, ref_attn = head_reference(pooled_ref, priors, params,
                                         num_groups=num_groups, fc_hidden_dim=fc_hidden_dim)

    np.testing.assert_allclose(np.asarray(preds), np.asarray(ref_preds), rtol=1e-2, atol=1e-2)
    np.testing.assert_allclose(np.asarray(attn), np.asarray(ref_attn), rtol=1e-2, atol=1e-2)
    print("KERNEL_OK")
</pallas_src>

<mosaic_0001>
module attributes {stable_mosaic.version = 11 : i64} {
  func.func @refine_head_kernel(%arg0: i32, %arg1: memref<1x16x128xbf16, #tpu.memory_space<vmem>>, %arg2: memref<1x16x12xf32, #tpu.memory_space<vmem>>, %arg3: memref<128x32xbf16, #tpu.memory_space<vmem>>, %arg4: memref<1x32xf32, #tpu.memory_space<vmem>>, %arg5: memref<32x40xf32, #tpu.memory_space<vmem>>, %arg6: memref<1x40xf32, #tpu.memory_space<vmem>>, %arg7: memref<32x64xf32, #tpu.memory_space<vmem>>, %arg8: memref<1x64xf32, #tpu.memory_space<vmem>>, %arg9: memref<64x32xf32, #tpu.memory_space<vmem>>, %arg10: memref<1x32xf32, #tpu.memory_space<vmem>>, %arg11: memref<32x64xf32, #tpu.memory_space<vmem>>, %arg12: memref<1x64xf32, #tpu.memory_space<vmem>>, %arg13: memref<64x12xf32, #tpu.memory_space<vmem>>, %arg14: memref<1x12xf32, #tpu.memory_space<vmem>>, %arg15: memref<1x16x12xf32, #tpu.memory_space<vmem>>, %arg16: memref<1x4x16x16xf32, #tpu.memory_space<vmem>>) attributes {dimension_semantics = [#tpu.dimension_semantics<parallel>], iteration_bounds = array<i64: 2>, scalar_prefetch = 0 : i64, scratch_operands = 0 : i64, tpu.core_type = #tpu.core_type<tc>, window_params = [{transform_indices = @transform_0, window_bounds = array<i64: 1, 16, 128>}, {transform_indices = @transform_1, window_bounds = array<i64: 1, 16, 12>}, {pipeline_mode = #tpu.pipeline_mode<synchronous>, transform_indices = @transform_2, window_bounds = array<i64: 128, 32>}, {pipeline_mode = #tpu.pipeline_mode<synchronous>, transform_indices = @transform_3, window_bounds = array<i64: 1, 32>}, {pipeline_mode = #tpu.pipeline_mode<synchronous>, transform_indices = @transform_4, window_bounds = array<i64: 32, 40>}, {pipeline_mode = #tpu.pipeline_mode<synchronous>, transform_indices = @transform_5, window_bounds = array<i64: 1, 40>}, {pipeline_mode = #tpu.pipeline_mode<synchronous>, transform_indices = @transform_6, window_bounds = array<i64: 32, 64>}, {pipeline_mode = #tpu.pipeline_mode<synchronous>, transform_indices = @transform_7, window_bounds = array<i64: 1, 64>}, {pipeline_mode = #tpu.pipeline_mode<synchronous>, transform_indices = @transform_8, window_bounds = array<i64: 64, 32>}, {pipeline_mode = #tpu.pipeline_mode<synchronous>, transform_indices = @transform_9, window_bounds = array<i64: 1, 32>}, {pipeline_mode = #tpu.pipeline_mode<synchronous>, transform_indices = @transform_10, window_bounds = array<i64: 32, 64>}, {pipeline_mode = #tpu.pipeline_mode<synchronous>, transform_indices = @transform_11, window_bounds = array<i64: 1, 64>}, {pipeline_mode = #tpu.pipeline_mode<synchronous>, transform_indices = @transform_12, window_bounds = array<i64: 64, 12>}, {pipeline_mode = #tpu.pipeline_mode<synchronous>, transform_indices = @transform_13, window_bounds = array<i64: 1, 12>}, {transform_indices = @transform_14, window_bounds = array<i64: 1, 16, 12>}, {transform_indices = @transform_15, window_bounds = array<i64: 1, 4, 16, 16>}]} {
    %c0 = arith.constant 0 : index
    %c0_0 = arith.constant 0 : index
    %c0_1 = arith.constant 0 : index
    %0 = vector.load %arg1[%c0, %c0_0, %c0_1] : memref<1x16x128xbf16, #tpu.memory_space<vmem>>, vector<1x16x128xbf16>
    %1 = vector.shape_cast %0 : vector<1x16x128xbf16> to vector<16x128xbf16>
    %c0_2 = arith.constant 0 : index
    %c0_3 = arith.constant 0 : index
    %2 = vector.load %arg3[%c0_2, %c0_3] : memref<128x32xbf16, #tpu.memory_space<vmem>>, vector<128x32xbf16>
    %cst = arith.constant dense<0.000000e+00> : vector<16x32xf32>
    %3 = tpu.matmul %1, %2, %cst {dimension_numbers = #tpu.dot_dimension_numbers<[1], [0], [0], [1], [0, 0, 1, 1], [], []>} : vector<16x128xbf16>, vector<128x32xbf16>, vector<16x32xf32> -> vector<16x32xf32>
    %c0_4 = arith.constant 0 : index
    %c0_5 = arith.constant 0 : index
    %4 = vector.load %arg4[%c0_4, %c0_5] : memref<1x32xf32, #tpu.memory_space<vmem>>, vector<1x32xf32>
    %5 = vector.broadcast %4 : vector<1x32xf32> to vector<16x32xf32>
    %6 = arith.addf %3, %5 : vector<16x32xf32>
    %c0_6 = arith.constant 0 : index
    %c0_7 = arith.constant 0 : index
    %7 = vector.load %arg5[%c0_6, %c0_7] : memref<32x40xf32, #tpu.memory_space<vmem>>, vector<32x40xf32>
    %cst_8 = arith.constant dense<0.000000e+00> : vector<16x40xf32>
    %8 = tpu.matmul %6, %7, %cst_8 {dimension_numbers = #tpu.dot_dimension_numbers<[1], [0], [0], [1], [0, 0, 1, 1], [], []>} : vector<16x32xf32>, vector<32x40xf32>, vector<16x40xf32> -> vector<16x40xf32>
    %c0_9 = arith.constant 0 : index
    %c0_10 = arith.constant 0 : index
    %9 = vector.load %arg6[%c0_9, %c0_10] : memref<1x40xf32, #tpu.memory_space<vmem>>, vector<1x40xf32>
    %10 = vector.broadcast %9 : vector<1x40xf32> to vector<16x40xf32>
    %11 = arith.addf %8, %10 : vector<16x40xf32>
    %12 = vector.extract_strided_slice %11 {offsets = [0, 0], sizes = [16, 8], strides = [1, 1]} : vector<16x40xf32> to vector<16x8xf32>
    %13 = vector.shape_cast %12 : vector<16x8xf32> to vector<1x16x8xf32>
    %14 = vector.shape_cast %13 : vector<1x16x8xf32> to vector<1x16x8xf32>
    %15 = vector.broadcast %14 : vector<1x16x8xf32> to vector<4x16x8xf32>
    %16 = vector.extract_strided_slice %11 {offsets = [0, 8], sizes = [16, 8], strides = [1, 1]} : vector<16x40xf32> to vector<16x8xf32>
    %17 = vector.extract_strided_slice %11 {offsets = [0, 16], sizes = [16, 8], strides = [1, 1]} : vector<16x40xf32> to vector<16x8xf32>
    %18 = vector.extract_strided_slice %11 {offsets = [0, 24], sizes = [16, 8], strides = [1, 1]} : vector<16x40xf32> to vector<16x8xf32>
    %19 = vector.extract_strided_slice %11 {offsets = [0, 32], sizes = [16, 8], strides = [1, 1]} : vector<16x40xf32> to vector<16x8xf32>
    %20 = vector.shape_cast %16 : vector<16x8xf32> to vector<1x16x8xf32>
    %21 = vector.shape_cast %17 : vector<16x8xf32> to vector<1x16x8xf32>
    %22 = vector.shape_cast %18 : vector<16x8xf32> to vector<1x16x8xf32>
    %23 = vector.shape_cast %19 : vector<16x8xf32> to vector<1x16x8xf32>
    %24 = tpu.concatenate %20, %21, %22, %23 in 0 : vector<1x16x8xf32>, vector<1x16x8xf32>, vector<1x16x8xf32>, vector<1x16x8xf32> -> vector<4x16x8xf32>
    %25 = vector.extract_strided_slice %6 {offsets = [0, 0], sizes = [16, 8], strides = [1, 1]} : vector<16x32xf32> to vector<16x8xf32>
    %26 = vector.extract_strided_slice %6 {offsets = [0, 8], sizes = [16, 8], strides = [1, 1]} : vector<16x32xf32> to vector<16x8xf32>
    %27 = vector.extract_strided_slice %6 {offsets = [0, 16], sizes = [16, 8], strides = [1, 1]} : vector<16x32xf32> to vector<16x8xf32>
    %28 = vector.extract_strided_slice %6 {offsets = [0, 24], sizes = [16, 8], strides = [1, 1]} : vector<16x32xf32> to vector<16x8xf32>
    %29 = vector.shape_cast %25 : vector<16x8xf32> to vector<1x16x8xf32>
    %30 = vector.shape_cast %26 : vector<16x8xf32> to vector<1x16x8xf32>
    %31 = vector.shape_cast %27 : vector<16x8xf32> to vector<1x16x8xf32>
    %32 = vector.shape_cast %28 : vector<16x8xf32> to vector<1x16x8xf32>
    %33 = tpu.concatenate %29, %30, %31, %32 in 0 : vector<1x16x8xf32>, vector<1x16x8xf32>, vector<1x16x8xf32>, vector<1x16x8xf32> -> vector<4x16x8xf32>
    "tpu.trace_start"() <{level = 10 : i32, message = "gnd,gmd->gnm"}> : () -> ()
    %cst_11 = arith.constant dense<0.000000e+00> : vector<4x16x16xf32>
    %34 = tpu.matmul %15, %24, %cst_11 {dimension_numbers = #tpu.dot_dimension_numbers<[2], [2], [1], [1], [0, 0, 0, 1, 1, 1], [0], [0]>} : vector<4x16x8xf32>, vector<4x16x8xf32>, vector<4x16x16xf32> -> vector<4x16x16xf32>
    "tpu.trace_stop"() : () -> ()
    %cst_12 = arith.constant 0.353553385 : f32
    %35 = vector.broadcast %cst_12 : f32 to vector<4x16x16xf32>
    %36 = arith.mulf %34, %35 : vector<4x16x16xf32>
    %cst_13 = arith.constant dense<0xFF800000> : vector<4x16xf32>
    %37 = vector.multi_reduction <maximumf>, %36, %cst_13 [2] : vector<4x16x16xf32> to vector<4x16xf32>
    %38 = vector.shape_cast %37 : vector<4x16xf32> to vector<4x16x1xf32>
    %39 = vector.broadcast %38 : vector<4x16x1xf32> to vector<4x16x16xf32>
    %40 = arith.subf %36, %39 : vector<4x16x16xf32>
    %41 = math.exp %40 : vector<4x16x16xf32>
    %cst_14 = arith.constant dense<0.000000e+00> : vector<4x16xf32>
    %42 = vector.multi_reduction <add>, %41, %cst_14 [2] : vector<4x16x16xf32> to vector<4x16xf32>
    %43 = vector.shape_cast %42 : vector<4x16xf32> to vector<4x16x1xf32>
    %44 = vector.broadcast %43 : vector<4x16x1xf32> to vector<4x16x16xf32>
    %45 = arith.divf %41, %44 : vector<4x16x16xf32>
    %c0_15 = arith.constant 0 : index
    %c0_16 = arith.constant 0 : index
    %c0_17 = arith.constant 0 : index
    %c0_18 = arith.constant 0 : index
    %46 = vector.load %arg16[%c0_15, %c0_16, %c0_17, %c0_18] : memref<1x4x16x16xf32, #tpu.memory_space<vmem>>, vector<1x4x16x16xf32>
    %47 = vector.shape_cast %46 : vector<1x4x16x16xf32> to vector<4x16x16xf32>
    %48 = vector.shape_cast %45 : vector<4x16x16xf32> to vector<1x4x16x16xf32>
    tpu.vector_store %arg16[%c0_15, %c0_16, %c0_17, %c0_18], %48 {strides = array<i32>} : memref<1x4x16x16xf32, #tpu.memory_space<vmem>>, vector<1x4x16x16xf32>,
    "tpu.trace_start"() <{level = 10 : i32, message = "gnm,gmd->gnd"}> : () -> ()
    %cst_19 = arith.constant dense<0.000000e+00> : vector<4x16x8xf32>
    %49 = tpu.matmul %45, %33, %cst_19 {dimension_numbers = #tpu.dot_dimension_numbers<[2], [1], [1], [2], [0, 0, 0, 1, 1, 2], [0], [0]>} : vector<4x16x16xf32>, vector<4x16x8xf32>, vector<4x16x8xf32> -> vector<4x16x8xf32>
    "tpu.trace_stop"() : () -> ()
    %50 = vector.extract_strided_slice %49 {offsets = [0, 0, 0], sizes = [1, 16, 8], strides = [1, 1, 1]} : vector<4x16x8xf32> to vector<1x16x8xf32>
    %51 = vector.shape_cast %50 : vector<1x16x8xf32> to vector<16x8xf32>
    %52 = vector.extract_strided_slice %49 {offsets = [1, 0, 0], sizes = [1, 16, 8], strides = [1, 1, 1]} : vector<4x16x8xf32> to vector<1x16x8xf32>
    %53 = vector.shape_cast %52 : vector<1x16x8xf32> to vector<16x8xf32>
    %54 = vector.extract_strided_slice %49 {offsets = [2, 0, 0], sizes = [1, 16, 8], strides = [1, 1, 1]} : vector<4x16x8xf32> to vector<1x16x8xf32>
    %55 = vector.shape_cast %54 : vector<1x16x8xf32> to vector<16x8xf32>
    %56 = vector.extract_strided_slice %49 {offsets = [3, 0, 0], sizes = [1, 16, 8], strides = [1, 1, 1]} : vector<4x16x8xf32> to vector<1x16x8xf32>
    %57 = vector.shape_cast %56 : vector<1x16x8xf32> to vector<16x8xf32>
    %58 = tpu.concatenate %51, %53, %55, %57 in 1 : vector<16x8xf32>, vector<16x8xf32>, vector<16x8xf32>, vector<16x8xf32> -> vector<16x32xf32>
    %c0_20 = arith.constant 0 : index
    %c0_21 = arith.constant 0 : index
    %59 = vector.load %arg7[%c0_20, %c0_21] : memref<32x64xf32, #tpu.memory_space<vmem>>, vector<32x64xf32>
    %cst_22 = arith.constant dense<0.000000e+00> : vector<16x64xf32>
    %60 = tpu.matmul %58, %59, %cst_22 {dimension_numbers = #tpu.dot_dimension_numbers<[1], [0], [0], [1], [0, 0, 1, 1], [], []>} : vector<16x32xf32>, vector<32x64xf32>, vector<16x64xf32> -> vector<16x64xf32>
    %c0_23 = arith.constant 0 : index
    %c0_24 = arith.constant 0 : index
    %61 = vector.load %arg8[%c0_23, %c0_24] : memref<1x64xf32, #tpu.memory_space<vmem>>, vector<1x64xf32>
    %62 = vector.broadcast %61 : vector<1x64xf32> to vector<16x64xf32>
    %63 = arith.addf %60, %62 : vector<16x64xf32>
    %cst_25 = arith.constant 0.000000e+00 : f32
    %64 = vector.broadcast %cst_25 : f32 to vector<16x64xf32>
    %65 = arith.maximumf %63, %64 : vector<16x64xf32>
    %c0_26 = arith.constant 0 : index
    %c0_27 = arith.constant 0 : index
    %66 = vector.load %arg9[%c0_26, %c0_27] : memref<64x32xf32, #tpu.memory_space<vmem>>, vector<64x32xf32>
    %cst_28 = arith.constant dense<0.000000e+00> : vector<16x32xf32>
    %67 = tpu.matmul %65, %66, %cst_28 {dimension_numbers = #tpu.dot_dimension_numbers<[1], [0], [0], [1], [0, 0, 1, 1], [], []>} : vector<16x64xf32>, vector<64x32xf32>, vector<16x32xf32> -> vector<16x32xf32>
    %68 = arith.addf %6, %67 : vector<16x32xf32>
    %c0_29 = arith.constant 0 : index
    %c0_30 = arith.constant 0 : index
    %69 = vector.load %arg10[%c0_29, %c0_30] : memref<1x32xf32, #tpu.memory_space<vmem>>, vector<1x32xf32>
    %70 = vector.broadcast %69 : vector<1x32xf32> to vector<16x32xf32>
    %71 = arith.addf %68, %70 : vector<16x32xf32>
    %c0_31 = arith.constant 0 : index
    %c0_32 = arith.constant 0 : index
    %72 = vector.load %arg11[%c0_31, %c0_32] : memref<32x64xf32, #tpu.memory_space<vmem>>, vector<32x64xf32>
    %cst_33 = arith.constant dense<0.000000e+00> : vector<16x64xf32>
    %73 = tpu.matmul %71, %72, %cst_33 {dimension_numbers = #tpu.dot_dimension_numbers<[1], [0], [0], [1], [0, 0, 1, 1], [], []>} : vector<16x32xf32>, vector<32x64xf32>, vector<16x64xf32> -> vector<16x64xf32>
    %c0_34 = arith.constant 0 : index
    %c0_35 = arith.constant 0 : index
    %74 = vector.load %arg12[%c0_34, %c0_35] : memref<1x64xf32, #tpu.memory_space<vmem>>, vector<1x64xf32>
    %75 = vector.broadcast %74 : vector<1x64xf32> to vector<16x64xf32>
    %76 = arith.addf %73, %75 : vector<16x64xf32>
    %cst_36 = arith.constant 0.000000e+00 : f32
    %77 = vector.broadcast %cst_36 : f32 to vector<16x64xf32>
    %78 = arith.maximumf %76, %77 : vector<16x64xf32>
    %c0_37 = arith.constant 0 : index
    %c0_38 = arith.constant 0 : index
    %79 = vector.load %arg13[%c0_37, %c0_38] : memref<64x12xf32, #tpu.memory_space<vmem>>, vector<64x12xf32>
    %cst_39 = arith.constant dense<0.000000e+00> : vector<16x12xf32>
    %80 = tpu.matmul %78, %79, %cst_39 {dimension_numbers = #tpu.dot_dimension_numbers<[1], [0], [0], [1], [0, 0, 1, 1], [], []>} : vector<16x64xf32>, vector<64x12xf32>, vector<16x12xf32> -> vector<16x12xf32>
    %c0_40 = arith.constant 0 : index
    %c0_41 = arith.constant 0 : index
    %81 = vector.load %arg14[%c0_40, %c0_41] : memref<1x12xf32, #tpu.memory_space<vmem>>, vector<1x12xf32>
    %82 = vector.broadcast %81 : vector<1x12xf32> to vector<16x12xf32>
    %83 = arith.addf %80, %82 : vector<16x12xf32>
    %c0_42 = arith.constant 0 : index
    %c0_43 = arith.constant 0 : index
    %c0_44 = arith.constant 0 : index
    %84 = vector.load %arg2[%c0_42, %c0_43, %c0_44] : memref<1x16x12xf32, #tpu.memory_space<vmem>>, vector<1x16x12xf32>
    %85 = vector.shape_cast %84 : vector<1x16x12xf32> to vector<16x12xf32>
    %86 = tpu.iota {dimensions = array<i32: 1>} : vector<16x12xi32>
    %c2_i32 = arith.constant 2 : i32
    %87 = vector.broadcast %c2_i32 : i32 to vector<16x12xi32>
    %88 = arith.cmpi sge, %86, %87 : vector<16x12xi32>
    %cst_45 = arith.constant 0.000000e+00 : f32
    %89 = vector.broadcast %cst_45 : f32 to vector<16x12xf32>
    %90 = arith.select %88, %85, %89 : vector<16x12xi1>, vector<16x12xf32>
    %91 = arith.addf %83, %90 : vector<16x12xf32>
    %c0_46 = arith.constant 0 : index
    %c0_47 = arith.constant 0 : index
    %c0_48 = arith.constant 0 : index
    %92 = vector.load %arg15[%c0_46, %c0_47, %c0_48] : memref<1x16x12xf32, #tpu.memory_space<vmem>>, vector<1x16x12xf32>
    %93 = vector.shape_cast %92 : vector<1x16x12xf32> to vector<16x12xf32>
    %94 = vector.shape_cast %91 : vector<16x12xf32> to vector<1x16x12xf32>
    tpu.vector_store %arg15[%c0_46, %c0_47, %c0_48], %94 {strides = array<i32>} : memref<1x16x12xf32, #tpu.memory_space<vmem>>, vector<1x16x12xf32>,
    return
  }
  func.func @transform_0(%arg0: i32) -> (i32, i32, i32) {
    %c0_i32 = arith.constant 0 : i32
    %c0_i32_0 = arith.constant 0 : i32
    %c0_i32_1 = arith.constant 0 : i32
    return %arg0, %c0_i32, %c0_i32_0 : i32, i32, i32
  }
  func.func @transform_1(%arg0: i32) -> (i32, i32, i32) {
    %c0_i32 = arith.constant 0 : i32
    %c0_i32_0 = arith.constant 0 : i32
    %c0_i32_1 = arith.constant 0 : i32
    return %arg0, %c0_i32, %c0_i32_0 : i32, i32, i32
  }
  func.func @transform_2(%arg0: i32) -> (i32, i32) {
    %c0_i32 = arith.constant 0 : i32
    %c0_i32_0 = arith.constant 0 : i32
    %c0_i32_1 = arith.constant 0 : i32
    return %c0_i32, %c0_i32_0 : i32, i32
  }
  func.func @transform_3(%arg0: i32) -> (i32, i32) {
    %c0_i32 = arith.constant 0 : i32
    %c0_i32_0 = arith.constant 0 : i32
    %c0_i32_1 = arith.constant 0 : i32
    return %c0_i32, %c0_i32_0 : i32, i32
  }
  func.func @transform_4(%arg0: i32) -> (i32, i32) {
    %c0_i32 = arith.constant 0 : i32
    %c0_i32_0 = arith.constant 0 : i32
    %c0_i32_1 = arith.constant 0 : i32
    return %c0_i32, %c0_i32_0 : i32, i32
  }
  func.func @transform_5(%arg0: i32) -> (i32, i32) {
    %c0_i32 = arith.constant 0 : i32
    %c0_i32_0 = arith.constant 0 : i32
    %c0_i32_1 = arith.constant 0 : i32
    return %c0_i32, %c0_i32_0 : i32, i32
  }
  func.func @transform_6(%arg0: i32) -> (i32, i32) {
    %c0_i32 = arith.constant 0 : i32
    %c0_i32_0 = arith.constant 0 : i32
    %c0_i32_1 = arith.constant 0 : i32
    return %c0_i32, %c0_i32_0 : i32, i32
  }
  func.func @transform_7(%arg0: i32) -> (i32, i32) {
    %c0_i32 = arith.constant 0 : i32
    %c0_i32_0 = arith.constant 0 : i32
    %c0_i32_1 = arith.constant 0 : i32
    return %c0_i32, %c0_i32_0 : i32, i32
  }
  func.func @transform_8(%arg0: i32) -> (i32, i32) {
    %c0_i32 = arith.constant 0 : i32
    %c0_i32_0 = arith.constant 0 : i32
    %c0_i32_1 = arith.constant 0 : i32
    return %c0_i32, %c0_i32_0 : i32, i32
  }
  func.func @transform_9(%arg0: i32) -> (i32, i32) {
    %c0_i32 = arith.constant 0 : i32
    %c0_i32_0 = arith.constant 0 : i32
    %c0_i32_1 = arith.constant 0 : i32
    return %c0_i32, %c0_i32_0 : i32, i32
  }
  func.func @transform_10(%arg0: i32) -> (i32, i32) {
    %c0_i32 = arith.constant 0 : i32
    %c0_i32_0 = arith.constant 0 : i32
    %c0_i32_1 = arith.constant 0 : i32
    return %c0_i32, %c0_i32_0 : i32, i32
  }
  func.func @transform_11(%arg0: i32) -> (i32, i32) {
    %c0_i32 = arith.constant 0 : i32
    %c0_i32_0 = arith.constant 0 : i32
    %c0_i32_1 = arith.constant 0 : i32
    return %c0_i32, %c0_i32_0 : i32, i32
  }
  func.func @transform_12(%arg0: i32) -> (i32, i32) {
    %c0_i32 = arith.constant 0 : i32
    %c0_i32_0 = arith.constant 0 : i32
    %c0_i32_1 = arith.constant 0 : i32
    return %c0_i32, %c0_i32_0 : i32, i32
  }
  func.func @transform_13(%arg0: i32) -> (i32, i32) {
    %c0_i32 = arith.constant 0 : i32
    %c0_i32_0 = arith.constant 0 : i32
    %c0_i32_1 = arith.constant 0 : i32
    return %c0_i32, %c0_i32_0 : i32, i32
  }
  func.func @transform_14(%arg0: i32) -> (i32, i32, i32) {
    %c0_i32 = arith.constant 0 : i32
    %c0_i32_0 = arith.constant 0 : i32
    %c0_i32_1 = arith.constant 0 : i32
    return %arg0, %c0_i32, %c0_i32_0 : i32, i32, i32
  }
  func.func @transform_15(%arg0: i32) -> (i32, i32, i32, i32) {
    %c0_i32 = arith.constant 0 : i32
    %c0_i32_0 = arith.constant 0 : i32
    %c0_i32_1 = arith.constant 0 : i32
    %c0_i32_2 = arith.constant 0 : i32
    return %arg0, %c0_i32, %c0_i32_0, %c0_i32_1 : i32, i32, i32, i32
  }
}

</mosaic_0001>

<bundles_post_ra>
// kernel: cascade_refine_head_forward.1
= control target key start
LH: loop header
LB: loop body
LE: loop exit
PB: predicated region body
PF: predicated region fallthrough
CT: control target
= control target key end

     0   :  { %s3001_s0 = inlined_call_operand.vmem [shape: bf16[2,16,128], index: 0, kind: input, shape index: {}]   ;;  %s3002_s1 = inlined_call_operand.vmem [shape: f32[2,16,12], index: 1, kind: input, shape index: {}]   ;;  %s3003_s2 = inlined_call_operand.vmem [shape: bf16[128,32], index: 2, kind: input, shape index: {}]   ;;  %s3004_s3 = inlined_call_operand.vmem [shape: f32[1,32], index: 3, kind: input, shape index: {}]   ;;  %s3005_s4 = inlined_call_operand.vmem [shape: f32[32,40], index: 4, kind: input, shape index: {}]   ;;  %s3006_s5 = inlined_call_operand.vmem [shape: f32[1,40], index: 5, kind: input, shape index: {}]   ;;  %s3007_s6 = inlined_call_operand.vmem [shape: f32[32,64], index: 6, kind: input, shape index: {}]   ;;  %s3008_s7 = inlined_call_operand.vmem [shape: f32[1,64], index: 7, kind: input, shape index: {}]   ;;  %s3009_s8 = inlined_call_operand.vmem [shape: f32[64,32], index: 8, kind: input, shape index: {}]   ;;  %s3010_s9 = inlined_call_operand.vmem [shape: f32[1,32], index: 9, kind: input, shape index: {}]   ;;  %s3011_s10 = inlined_call_operand.vmem [shape: f32[32,64], index: 10, kind: input, shape index: {}]   ;;  %s3012_s11 = inlined_call_operand.vmem [shape: f32[1,64], index: 11, kind: input, shape index: {}]   ;;  %s3013_s12 = inlined_call_operand.vmem [shape: f32[64,12], index: 12, kind: input, shape index: {}]   ;;  %s3014_s13 = inlined_call_operand.vmem [shape: f32[1,12], index: 13, kind: input, shape index: {}]   ;;  %s3015_s14 = inlined_call_operand.vmem [shape: f32[2,16,12], index: 14, kind: output, shape index: {0}]   ;;  %s3016_s15 = inlined_call_operand.hbm [shape: f32[2,4,16,16], index: 15, kind: output, shape index: {1}]  }
   0x1   :  { %3024 = sst [smem:[#allocation10_spill]] %s3001_s0 }
   0x2   :  { %21 = vsyncpa [#allocation3], 0 }
   0x3   :  { %23 = vsyncpa [#allocation3 + $0x1], 0  ;;  %s2619_s18 = smov 0   ;;  %s2621_s19 = smov 0  }
   0x4   :  { %s2623_s20 = smov 0   ;;  %s2625_s21 = smov 0  }
   0x5 LB: > { %3025 = sst [smem:[#allocation5_spill]] %s2515_s18  ;;  %s2640_s22 = sadd.s32 4294967295, %s2527_s21   ;;  %s2527_s21 = sphi %s2625_s21, %s3037_s21   ;;  %s2523_s20 = sphi %s2623_s20, %s3039_s20   ;;  %s2519_s19 = sphi %s2621_s19, %s3041_s19   ;;  %s2515_s18 = sphi %s2619_s18, %s3040_s18  }
   0x6   : > { %3026 = sst [smem:[#allocation6_spill]] %s2523_s20  ;;  %s2083_s23 = sadd.s32 4294967294, %s2527_s21  }
   0x7   : > { %s2644_s24 = sadd.s32 1, %s2527_s21   ;;  %s366_s25 = sadd.s32 1, %s2523_s20 }
   0x8   : > { %3027 = sst [smem:[#allocation7_spill]] %s2644_s24  ;;  %s363_s26 = ssub.s32 %s2527_s21, %s2644_s24 }
   0x9   : > { %p376_p0 = scmp.ne.s32.totalorder %s2523_s20, %s2519_s19  ;;  %p364_p1 = scmp.eq.s32.totalorder %s363_s26, 0 }
   0xa   : > { %p377_p2 = scmp.eq.s32.totalorder %s2640_s22, 1  ;;  %p382_p3 = scmp.ne.s32.totalorder %s2519_s19, %s2515_s18 }
   0xb   : > { %p383_p4 = scmp.eq.s32.totalorder %s2083_s23, 1  ;;  %p2086_p7 = scmp.ge.s32.totalorder %s2527_s21, 1 }
   0xc   : > { %s2655_s27 = scalar_select %p364_p1, %s2523_s20, %s366_s25  }
   0xd   : > { %p2657_p5 = por %p377_p2, %p376_p0  ;;  %p2661_p6 = por %p383_p4, %p382_p3 }
   0xe   : > { %3028 = sst [smem:[#allocation8_spill]] %s2655_s27  ;;  %p453_p8 = scmp.lt.s32.totalorder %s2527_s21, 3 }
   0xf   : > { %s3030_s29 = scalar_select %p2661_p6, 1, 0 }
  0x10   : > { %p454_p9 = pnand %p2086_p7, %p453_p8 }
  0x11   : > { %3031 = sst [smem:[#allocation9_spill]] %s3030_s29  ;;  %p511_p10 = scmp.lt.s32.totalorder (!%p454_p9), %s2640_s22, 1 }
  0x12   : > { %457 = sbr.rel (%p454_p9) target bundleno = 2331 (0x91b), region = 76  ;;  %s3032_s0 = sld [smem:[#allocation10_spill]] (!%p454_p9) }
  0x13   : > { %s2531_s23 = smov (!%p454_p9), 112   ;;  %s2532_s26 = smov (!%p454_p9), 120  }
  0x14   : > { %s2533_s30 = smov (!%p454_p9), 104   ;;  %s3022_s20 = sand.u32 (!%p454_p9), 1, %s2519_s19  }
  0x15   : > { %s2087_s27 = sshll.u32 (!%p454_p9), %s3022_s20, 6  ;;  %s2535_s29 = smov (!%p454_p9), 16  }
  0x16   : > { %s2151_s17 = sshll.u32 (!%p454_p9), %s2640_s22, 10 }
  0x17   : > { %v2426_v0 = vld [vmem:[%s3003_s2 + $0x38] sm:$0xff]   ;;  %v2529_v1 = vmov 0.0   ;;  %v2427_v2 = vld [vmem:[%s3003_s2 + $0x30] sm:$0xff]   ;;  %vm2530_vm0 = vmmov 0   ;;  %s2675_s25 = scalar_select %p511_p10, %s2640_s22, 1  ;;  %v2428_v3 = vld [vmem:[%s3003_s2 + $0x28] sm:$0xff]  }
  0x18   : > { %2231 = vmatprep.subr.bf16.mxu0 %v2529_v1  ;;  %2247 = vmatprep.mubr.msk.bf16.mxu0 %vm2530_vm0, %v2529_v1  ;;  %v650_v4 = vld [vmem:[%s3005_s4 + $0x18] sm:$0xff]  ;;  %v2429_v5 = vld [vmem:[%s3003_s2 + $0x20] sm:$0xff]   ;;  %v2431_v7 = vld [vmem:[%s3003_s2 + $0x10] sm:$0xff]   ;;  %vm658_vm1 = vcmask 261120   ;;  %vm772_vm2 = vcmask 64512   ;;  %vm1113_vm3 = vcmask 130048   ;;  %s2944_s20 = scalar_lea.hbm %s3016_s15, %s2151_s17 }
  0x19   : > { %2232 = vmatpush3.bf16.msra.mxu0 %v2426_v0  ;;  %s2148_s16 = sshll.u32 %s2675_s25, 3  ;;  %2251 = vmatprep.subr.mxu1 %v650_v4  ;;  %v2430_v6 = vld [vmem:[%s3003_s2 + $0x18] sm:$0xff]   ;;  %v2432_v8 = vld [vmem:[%s3003_s2 + $0x8] sm:$0xff]   ;;  %v2433_v9 = vld [vmem:[%s3003_s2] sm:$0xff]   ;;  %vm1562_vm4 = vcmask 195584   ;;  %vm1667_vm5 = vcmask 523264  }
  0x1a   : > { %2233 = vmatprep.subr.bf16.mxu0 %v2529_v1  ;;  %s515_s24 = scalar_lea.vmem %s3032_s0, %s2148_s16  ;;  %2252 = vmatpush3.msra.mxu1 %v650_v4  ;;  %v649_v11 = vld [vmem:[%s3005_s4 + $0x10] sm:$0xff]  ;;  %v648_v12 = vld [vmem:[%s3005_s4 + $0x8] sm:$0xff]  ;;  %v647_v13 = vld [vmem:[%s3005_s4] sm:$0xff]  ;;  %s2812_s16 = scalar_lea.vmem [#allocation2], %s2087_s27 }
  0x1b   : > { %v2434_v10 = vld [vmem:[%s515_s24] sm:$0xff]   ;;  %2253 = vmatprep.subr.mxu1 %v649_v11  ;;  %s3023_s24 = smov 8   ;;  %s1984_s18 = sshll.u32 %s2812_s16, 4  ;;  %s2946_s18 = int_to_ptr.vmem [resolvable:$true] %s1984_s18 }
  0x1c   : > { %2254 = vmatpush3.msra.mxu1 %v649_v11  ;;  %v2094_v14 = vld [vmem:[%s3004_s3] ss:$0 sm:$0xff]  ;;  %s2467_s27 = scalar_lea.vmem %s2946_s18, 1024  ;;  %s2537_s22 = smov [#allocation2]  }
  0x1d   : > { %2234 = vmatpush3.bf16.msra.mxu0 %v2427_v2  ;;  %2255 = vmatprep.subr.mxu1 %v648_v12  ;;  %v2104_v21 = vld [vmem:[%s3006_s5] ss:$0 sm:$0xff]  ;;  %p2468_p11 = scmp.ne.s32.totalorder %s2946_s18, %s2467_s27 }
  0x1e   : > { %2235 = vmatprep.subr.bf16.mxu0 %v2529_v1  ;;  %2256 = vmatpush3.msra.mxu1 %v648_v12 }
  0x1f   : > { %2257 = vmatprep.subr.mxu1 %v647_v13  ;;  %p2469_p12 = pnand %p2468_p11, %p2657_p5 }
  0x20   : > { %2258 = vmatpush3.msra.mxu1 %v647_v13 }
  0x21   : > { %2236 = vmatpush3.bf16.msra.mxu0 %v2428_v3  ;;  %p2470_p13 = pneg %p2469_p12 }
  0x22   : > { %2237 = vmatprep.subr.bf16.mxu0 %v2529_v1 }
  0x25   : > { %2238 = vmatpush3.bf16.msra.mxu0 %v2429_v5 }
  0x26   : > { %2239 = vmatprep.subr.bf16.mxu0 %v2529_v1 }
  0x29   : > { %2240 = vmatpush3.bf16.msra.mxu0 %v2430_v6 }
  0x2a   : > { %2241 = vmatprep.subr.bf16.mxu0 %v2529_v1 }
  0x2d   : > { %2242 = vmatpush3.bf16.msra.mxu0 %v2431_v7 }
  0x2e   : > { %2243 = vmatprep.subr.bf16.mxu0 %v2529_v1 }
  0x31   : > { %2244 = vmatpush3.bf16.msra.mxu0 %v2432_v8 }
  0x32   : > { %2245 = vmatprep.subr.bf16.mxu0 %v2529_v1 }
  0x35   : > { %2246 = vmatpush3.bf16.msra.mxu0 %v2433_v9 }
  0x38   : > { %2248 = vmatmul.mubr.bf16.vlgmr.msra.gmra.mxu0 %v2434_v10 }
  0xf8   : > { %v640_v15 = vpop.f32.mrf.mxu0 }
  0xf9   : > { %v2714_v16 = vadd.f32 %v2094_v14, %v640_v15 }
  0xfa   : > { %v2249_v17 = vpop.f32.mrf.mxu0 }
  0xfb   : > { %2259 = vmatprep.mubr.msk.f32.mxu1 %vm658_vm1, %v2714_v16 }
  0xfc   : > { %v643_v18 = vpop.f32.mrf.mxu0 }
  0xfd   : > { %v2718_v19 = vadd.f32 %v2094_v14, %v643_v18 }
  0xfe   : > { %v2250_v20 = vpop.f32.mrf.mxu0 }
  0xff   : > { %2260 = vmatmul.mubr.msk.f32.vlgmr.msra.gmra.mxu1 %vm658_vm1, %v2718_v19 }
 0x1bf   : > { %v2261_v22 = vpop.f32.mrf.mxu1 }
 0x1c0   : > { %v737_v23 = vadd.f32 %v2261_v22, %v2104_v21 }
 0x1c1   : > { %v731_v24 = vpop.f32.mrf.mxu1 }
 0x1c2   : > { %v732_v25 = vadd.f32 %v2104_v21, %v731_v24  ;;  %748 = vrot.lane.b32.xlu1 %v737_v23, %s2531_s23  ;;  %744 = vrot.lane.b32.xlu0 %v737_v23, %s2532_s26 }
 0x1c4   : > { %2266 = vmatprep.mubr.msk.f32.mxu1 %vm772_vm2, %v732_v25  ;;  %2287 = vmatprep.mubr.msk.f32.mxu0 %vm772_vm2, %v732_v25 }
 0x1c6   : > { %752 = vrot.lane.b32.xlu1 %v737_v23, %s2533_s30  ;;  %742 = vrot.lane.b32.xlu0 %v732_v25, %s2532_s26 }
 0x1ca   : > { %750 = vrot.lane.b32.xlu1 %v732_v25, %s2533_s30  ;;  %746 = vrot.lane.b32.xlu0 %v732_v25, %s2531_s23 }
 0x234   : > { %v745_v26 = vpop.permute.xlu0 %744  ;;  %v749_v27 = vpop.permute.xlu1 %748 }
 0x235   : > { %2262 = vmatprep.subr.msk.mxu1 %vm772_vm2, %v745_v26  ;;  %858 = vrot.lane.b32.xlu0 %v745_v26, %s2532_s26 }
 0x236   : > { %2263 = vmatpush3.xpose.msk.msra.mxu1 %vm772_vm2, %v745_v26 }
 0x238   : > { %v743_v28 = vpop.permute.xlu0 %742  ;;  %v753_v29 = vpop.permute.xlu1 %752 }
 0x239   : > { %941 = vrot.lane.b32.xlu0 %v749_v27, %s2532_s26  ;;  %2264 = vmatprep.subr.msk.mxu1 %vm772_vm2, %v743_v28 }
 0x23a   : > { %856 = vrot.lane.b32.xlu1 %v743_v28, %s2532_s26  ;;  %2265 = vmatpush3.xpose.msk.msra.mxu1 %vm772_vm2, %v743_v28 }
 0x23c   : > { %v747_v30 = vpop.permute.xlu0 %746  ;;  %v751_v31 = vpop.permute.xlu1 %750 }
 0x23d   : > { %939 = vrot.lane.b32.xlu0 %v747_v30, %s2532_s26  ;;  %2267 = vmatmul.mubr.msk.f32.vlgmr.msra.gmra.mxu1 %vm772_vm2, %v737_v23 }
 0x23e   : > { %1024 = vrot.lane.b32.xlu1 %v753_v29, %s2532_s26  ;;  %2273 = vmatprep.mubr.msk.f32.mxu1 %vm772_vm2, %v732_v25 }
 0x242   : > { %1022 = vrot.lane.b32.xlu1 %v751_v31, %s2532_s26 }
 0x2a7   : > { %v859_v32 = vpop.permute.xlu0 %858 }
 0x2a8   : > { %2269 = vmatprep.subr.msk.mxu1 %vm772_vm2, %v859_v32 }
 0x2a9   : > { %2270 = vmatpush3.xpose.msk.msra.mxu1 %vm772_vm2, %v859_v32 }
 0x2ab   : > { %v942_v34 = vpop.permute.xlu0 %941 }
 0x2ac   : > { %v857_v33 = vpop.permute.xlu1 %856 }
 0x2ad   : > { %2271 = vmatprep.subr.msk.mxu1 %vm772_vm2, %v857_v33 }
 0x2ae   : > { %2272 = vmatpush3.xpose.msk.msra.mxu1 %vm772_vm2, %v857_v33 }
 0x2af   : > { %2276 = vmatprep.subr.msk.mxu1 %vm772_vm2, %v942_v34  ;;  %v940_v36 = vpop.permute.xlu0 %939 }
 0x2b0   : > { %v1025_v35 = vpop.permute.xlu1 %1024 }
 0x2b1   : > { %2274 = vmatmul.mubr.msk.f32.vlgmr.msra.gmra.mxu1 %vm772_vm2, %v737_v23  ;;  %2283 = vmatprep.subr.msk.mxu0 %vm772_vm2, %v1025_v35 }
 0x2b2   : > { %2277 = vmatpush3.xpose.msk.msra.mxu1 %vm772_vm2, %v942_v34  ;;  %2280 = vmatprep.mubr.msk.f32.mxu1 %vm772_vm2, %v732_v25 }
 0x2b3   : > { %2284 = vmatpush3.xpose.msk.msra.mxu0 %vm772_vm2, %v1025_v35  ;;  %2278 = vmatprep.subr.msk.mxu1 %vm772_vm2, %v940_v36 }
 0x2b4   : > { %v1023_v37 = vpop.permute.xlu1 %1022 }
 0x2b5   : > { %2285 = vmatprep.subr.msk.mxu0 %vm772_vm2, %v1023_v37 }
 0x2b6   : > { %2279 = vmatpush3.xpose.msk.msra.mxu1 %vm772_vm2, %v940_v36 }
 0x2b7   : > { %2286 = vmatpush3.xpose.msk.msra.mxu0 %vm772_vm2, %v1023_v37  ;;  %2290 = vmatprep.subr.mxu1 %v2718_v19 }
 0x2b9   : > { %2281 = vmatmul.mubr.msk.f32.vlgmr.msra.gmra.mxu1 %vm772_vm2, %v737_v23 }
 0x2ba   : > { %2288 = vmatmul.mubr.msk.f32.vlgmr.msra.gmra.mxu0 %vm772_vm2, %v737_v23  ;;  %2291 = vmatpush3.msra.mxu1 %v2718_v19 }
 0x2bb   : > { %2292 = vmatprep.subr.mxu1 %v2714_v16 }
 0x2bc   : > { %2293 = vmatpush3.msra.mxu1 %v2714_v16 }
 0x2fd   : > { %v2268_v38 = vpop.f32.mrf.mxu1 }
 0x2fe   : > { %v1106_v39 = vmul.f32 0.35355338, %v2268_v38 }
 0x2ff   : > { %v847_v40 = vpop.f32.mrf.mxu1 }
 0x300   : > { %v1105_v41 = vmul.f32 0.35355338, %v847_v40  ;;  %v1117_v42 = vsel %vm1113_vm3, %v1106_v39, -inf }
 0x301   : > { %1118 = vmax.xlane.f32.xlu1 %v1117_v42 }
 0x302   : > { %v1114_v43 = vsel %vm1113_vm3, %v1105_v41, -inf }
 0x303   : > { %1115 = vmax.xlane.f32.xlu0 %v1114_v43 }
 0x371   : > { %v2275_v44 = vpop.f32.mrf.mxu1 }
 0x372   : > { %v1108_v45 = vmul.f32 0.35355338, %v2275_v44 }
 0x373   : > { %v930_v46 = vpop.f32.mrf.mxu1 }
 0x374   : > { %v1107_v47 = vmul.f32 0.35355338, %v930_v46  ;;  %v1123_v48 = vsel %vm1113_vm3, %v1108_v45, -inf }
 0x375   : > { %1124 = vmax.xlane.f32.xlu0 %v1123_v48 }
 0x376   : > { %v1120_v49 = vsel %vm1113_vm3, %v1107_v47, -inf }
 0x379   : > { %1121 = vmax.xlane.f32.xlu0 %v1120_v49  ;;  %v2282_v50 = vpop.f32.mrf.mxu1 }
 0x37a   : > { %v1110_v51 = vmul.f32 0.35355338, %v2282_v50  ;;  %v2289_v52 = vpop.f32.mrf.mxu0 }
 0x37b   : > { %v1013_v53 = vpop.f32.mrf.mxu1  ;;  %v1112_v54 = vmul.f32 0.35355338, %v2289_v52 }
 0x37c   : > { %v1109_v55 = vmul.f32 0.35355338, %v1013_v53  ;;  %v1096_v56 = vpop.f32.mrf.mxu0  ;;  %v1129_v57 = vsel %vm1113_vm3, %v1110_v51, -inf }
 0x37d   : > { %1130 = vmax.xlane.f32.xlu0 %v1129_v57  ;;  %v1111_v58 = vmul.f32 0.35355338, %v1096_v56  ;;  %v1135_v60 = vsel %vm1113_vm3, %v1112_v54, -inf }
 0x37e   : > { %v1126_v59 = vsel %vm1113_vm3, %v1109_v55, -inf }
 0x37f   : > { %1127 = vmax.xlane.f32.xlu1 %v1126_v59  ;;  %v1132_v61 = vsel %vm1113_vm3, %v1111_v58, -inf }
 0x381   : > { %1136 = vmax.xlane.f32.xlu0 %v1135_v60 }
 0x383   : > { %1133 = vmax.xlane.f32.xlu1 %v1132_v61 }
 0x38a   : > { %v1119_v62 = vpop.xlane.xlu1 %1118 }
 0x38b   : > { %v1139_v63 = vsub.f32 %v1106_v39, %v1119_v62 }
 0x38c   : > { %v1116_v1 = vpop.xlane.xlu0 %1115 }
 0x38d   : > { %v1148_v0 = vmul.f32 1.442695, %v1139_v63  ;;  %v1138_v2 = vsub.f32 %v1105_v41, %v1116_v1 }
 0x38f   : > { %2435 = vpow2.f32 %v1148_v0  ;;  %v1146_v3 = vmul.f32 1.442695, %v1138_v2 }
 0x391   : > { %2437 = vpow2.f32 %v1146_v3 }
 0x394   : > { %756 = vrot.lane.b32.xlu1 %v2718_v19, %s2532_s26 }
 0x397   : > { %754 = vrot.lane.b32.xlu0 %v2714_v16, %s2532_s26  ;;  %s3033_s26 = sand.u32 1, %s2519_s19  }
 0x398   : > { %762 = vrot.lane.b32.xlu1 %v2718_v19, %s2531_s23 }
 0x39c   : > { %768 = vrot.lane.b32.xlu1 %v2718_v19, %s2533_s30  ;;  %v2781_v4 = vpop.eup %2435 }
 0x39d   : > { %v1165_v5 = vsel %vm1113_vm3, %v2781_v4, 0.0 }
 0x39e   : > { %v2785_v6 = vpop.eup %2437 }
 0x39f   : > { %v1162_v7 = vsel %vm1113_vm3, %v2785_v6, 0.0 }
 0x3b6   : > { %1166 = vadd.xlane.f32.xlu0 %v1165_v5 }
 0x3c0   : > { %1163 = vadd.xlane.f32.xlu1 %v1162_v7 }
 0x3fe   : > { %v1125_v8 = vpop.xlane.xlu0 %1124 }
 0x3ff   : > { %v1141_v9 = vsub.f32 %v1108_v45, %v1125_v8 }
 0x401   : > { %v1152_v10 = vmul.f32 1.442695, %v1141_v9 }
 0x402   : > { %v1122_v11 = vpop.xlane.xlu0 %1121 }
 0x403   : > { %2439 = vpow2.f32 %v1152_v10  ;;  %v1140_v12 = vsub.f32 %v1107_v47, %v1122_v11  ;;  %v1568_v10 = vld [vmem:[%s3007_s6 + $0x18] sm:$0xff]  ;;  %v1567_v11 = vld [vmem:[%s3007_s6 + $0x10] sm:$0xff] }
 0x405   : > { %v1150_v13 = vmul.f32 1.442695, %v1140_v12  ;;  %v1566_v12 = vld [vmem:[%s3007_s6 + $0x8] sm:$0xff] }
 0x406   : > { %v1131_v14 = vpop.xlane.xlu0 %1130 }
 0x407   : > { %2441 = vpow2.f32 %v1150_v13  ;;  %v1143_v15 = vsub.f32 %v1110_v51, %v1131_v14  ;;  %v1565_v13 = vld [vmem:[%s3007_s6] sm:$0xff]  ;;  %v1666_v14 = vld [vmem:[%s3009_s8 + $0x38] sm:$0xff] }
 0x408   : > { %v1128_v17 = vpop.xlane.xlu1 %1127 }
 0x409   : > { %v1142_v20 = vsub.f32 %v1109_v55, %v1128_v17  ;;  %v1156_v22 = vmul.f32 1.442695, %v1143_v15 }
 0x40a   : > { %v1137_v18 = vpop.xlane.xlu0 %1136 }
 0x40b   : > { %v1145_v21 = vsub.f32 %v1112_v54, %v1137_v18  ;;  %v1154_v26 = vmul.f32 1.442695, %v1142_v20 }
 0x40c   : > { %v1134_v23 = vpop.xlane.xlu1 %1133 }
 0x40d   : > { %v1160_v24 = vmul.f32 1.442695, %v1145_v21  ;;  %v1144_v25 = vsub.f32 %v1111_v58, %v1134_v23 }
 0x40e   : > { %v755_v42 = vpop.permute.xlu0 %754 }
 0x40f   : > { %2443 = vpow2.f32 %v1160_v24  ;;  %v1158_v27 = vmul.f32 1.442695, %v1144_v25 }
 0x410   : > { %v2440_v28 = vpop.eup %2439  ;;  %2445 = vpow2.f32 %v1156_v22  ;;  %v757_v29 = vpop.permute.xlu1 %756 }
 0x411   : > { %2447 = vpow2.f32 %v1158_v27  ;;  %2297 = vmatprep.subr.mxu1 %v757_v29  ;;  %v1171_v30 = vsel %vm1113_vm3, %v2440_v28, 0.0 }
 0x412   : > { %1172 = vadd.xlane.f32.xlu0 %v1171_v30  ;;  %2449 = vpow2.f32 %v1154_v26 }
 0x414   : > { %v2442_v31 = vpop.eup %2441  ;;  %v763_v32 = vpop.permute.xlu1 %762 }
 0x415   : > { %2304 = vmatprep.subr.mxu0 %v763_v32  ;;  %v1168_v33 = vsel %vm1113_vm3, %v2442_v31, 0.0 }
 0x416   : > { %1169 = vadd.xlane.f32.xlu1 %v1168_v33  ;;  %2305 = vmatpush3.msra.mxu0 %v763_v32  ;;  %v1665_v33 = vld [vmem:[%s3009_s8 + $0x30] sm:$0xff] }
 0x418   : > { %v769_v44 = vpop.permute.xlu1 %768 }
 0x41c   : > { %v2791_v34 = vpop.eup %2443 }
 0x41d   : > { %v2793_v35 = vpop.eup %2445  ;;  %v1183_v36 = vsel %vm1113_vm3, %v2791_v34, 0.0 }
 0x41e   : > { %v2448_v37 = vpop.eup %2447  ;;  %1184 = vadd.xlane.f32.xlu0 %v1183_v36  ;;  %v1177_v40 = vsel %vm1113_vm3, %v2793_v35, 0.0  ;;  %v1662_v36 = vld [vmem:[%s3009_s8 + $0x18] sm:$0xff] }
 0x41f   : > { %v1180_v38 = vsel %vm1113_vm3, %v2448_v37, 0.0  ;;  %v2798_v39 = vpop.eup %2449 }
 0x420   : > { %1181 = vadd.xlane.f32.xlu1 %v1180_v38  ;;  %v1174_v41 = vsel %vm1113_vm3, %v2798_v39, 0.0  ;;  %v1660_v38 = vld [vmem:[%s3009_s8 + $0x8] sm:$0xff] }
 0x422   : > { %1178 = vadd.xlane.f32.xlu0 %v1177_v40  ;;  %v2131_v40 = vld [vmem:[%s3008_s7] ss:$0 sm:$0xff] }
 0x424   : > { %1175 = vadd.xlane.f32.xlu1 %v1174_v41 }
 0x435   : > { %766 = vrot.lane.b32.xlu1 %v2714_v16, %s2533_s30  ;;  %s2950_s30 = scalar_lea.sflag [#allocation3], %s3033_s26 }
 0x438   : > { %760 = vrot.lane.b32.xlu0 %v2714_v16, %s2531_s23  ;;  %s2536_s23 = smov 24  }
 0x43f   : > { %v1167_v43 = vpop.xlane.xlu0 %1166 }
 0x440   : > { %2451 = vrcp.f32 %v1167_v43 }
 0x449   : > { %v1164_v45 = vpop.xlane.xlu1 %1163 }
 0x44a   : > { %2453 = vrcp.f32 %v1164_v45 }
 0x44d   : > { %v2452_v46 = vpop.eup %2451 }
 0x44e   : > { %v1189_v47 = vmul.f32 %v2452_v46, %v2781_v4 }
 0x450   : > { %1203 = vst.msk [vmem:[%s2812_s16 + $0x8] sm:$0xff] %vm1113_vm3, %v1189_v47 }
 0x457   : > { %v2454_v48 = vpop.eup %2453 }
 0x458   : > { %v1187_v49 = vmul.f32 %v2454_v48, %v2785_v6  ;;  %v1762_v48 = vld [vmem:[%s3011_s10 + $0x10] sm:$0xff] }
 0x45a   : > { %1202 = vst.msk [vmem:[%s2812_s16] sm:$0xff] %vm1113_vm3, %v1187_v49  ;;  %2294 = vmatprep.mubr.msk.f32.mxu1 %vm1113_vm3, %v1187_v49  ;;  %v1761_v49 = vld [vmem:[%s3011_s10 + $0x8] sm:$0xff] }
 0x45b   : > { %2295 = vmatmul.mubr.msk.f32.vlgmr.msra.gmra.mxu1 %vm1113_vm3, %v1189_v47  ;;  %v1763_v47 = vld [vmem:[%s3011_s10 + $0x18] sm:$0xff] }
 0x45c   : > { %2298 = vmatpush3.msra.mxu1 %v757_v29 }
 0x45d   : > { %2299 = vmatprep.subr.mxu1 %v755_v42 }
 0x45e   : > { %2300 = vmatpush3.msra.mxu1 %v755_v42 }
 0x45f   : > { %2311 = vmatprep.subr.mxu1 %v769_v44 }
 0x49b   : > { %v1173_v50 = vpop.xlane.xlu0 %1172 }
 0x49c   : > { %2455 = vrcp.f32 %v1173_v50  ;;  %v1760_v50 = vld [vmem:[%s3011_s10] sm:$0xff] }
 0x49f   : > { %v1170_v51 = vpop.xlane.xlu1 %1169 }
 0x4a0   : > { %2457 = vrcp.f32 %v1170_v51  ;;  %v1861_v51 = vld [vmem:[%s3013_s12 + $0x38] sm:$0xff] }
 0x4a7   : > { %v1185_v52 = vpop.xlane.xlu0 %1184 }
 0x4a8   : > { %2459 = vrcp.f32 %v1185_v52 }
 0x4a9   : > { %v2456_v53 = vpop.eup %2455  ;;  %v1182_v54 = vpop.xlane.xlu1 %1181 }
 0x4aa   : > { %2461 = vrcp.f32 %v1182_v54  ;;  %v1193_v55 = vmul.f32 %v2456_v53, %v2440_v28 }
 0x4ab   : > { %v1179_v56 = vpop.xlane.xlu0 %1178 }
 0x4ac   : > { %2463 = vrcp.f32 %v1179_v56  ;;  %1205 = vst.msk [vmem:[%s2812_s16 + $0x18] sm:$0xff] %vm1113_vm3, %v1193_v55 }
 0x4ad   : > { %v2458_v57 = vpop.eup %2457  ;;  %v1176_v58 = vpop.xlane.xlu1 %1175 }
 0x4ae   : > { %2465 = vrcp.f32 %v1176_v58  ;;  %v1191_v59 = vmul.f32 %v2458_v57, %v2442_v31 }
 0x4af   : > { %v761_v60 = vpop.permute.xlu0 %760 }
 0x4b0   : > { %1204 = vst.msk [vmem:[%s2812_s16 + $0x10] sm:$0xff] %vm1113_vm3, %v1191_v59  ;;  %2301 = vmatprep.mubr.msk.f32.mxu1 %vm1113_vm3, %v1191_v59  ;;  %2306 = vmatprep.subr.mxu0 %v761_v60  ;;  %v1860_v59 = vld [vmem:[%s3013_s12 + $0x30] sm:$0xff] }
 0x4b1   : > { %2302 = vmatmul.mubr.msk.f32.vlgmr.msra.gmra.mxu1 %vm1113_vm3, %v1193_v55  ;;  %2307 = vmatpush3.msra.mxu0 %v761_v60  ;;  %v767_v61 = vpop.permute.xlu1 %766  ;;  %v2136_v55 = vld [vmem:[%s3010_s9] ss:$0 sm:$0xff]  ;;  %v1857_v60 = vld [vmem:[%s3013_s12 + $0x18] sm:$0xff] }
 0x4b2   : > { %2312 = vmatpush3.msra.mxu1 %v769_v44  ;;  %2348 = vmatprep.subr.mxu0 %v1763_v47 }
 0x4b3   : > { %2313 = vmatprep.subr.mxu1 %v767_v61 }
 0x4b4   : > { %2314 = vmatpush3.msra.mxu1 %v767_v61  ;;  %v1856_v61 = vld [vmem:[%s3013_s12 + $0x10] sm:$0xff] }
 0x4b5   : > { %v2460_v62 = vpop.eup %2459  ;;  %2318 = vmatprep.subr.mxu1 %v1568_v10 }
 0x4b6   : > { %v1201_v63 = vmul.f32 %v2460_v62, %v2791_v34  ;;  %v1664_v34 = vld [vmem:[%s3009_s8 + $0x28] sm:$0xff] }
 0x4b7   : > { %v2462_v0 = vpop.eup %2461  ;;  %v1855_v62 = vld [vmem:[%s3013_s12 + $0x8] sm:$0xff] }
 0x4b8   : > { %v1199_v1 = vmul.f32 %v2462_v0, %v2448_v37  ;;  %1209 = vst.msk [vmem:[%s2812_s16 + $0x38] sm:$0xff] %vm1113_vm3, %v1201_v63  ;;  %v1661_v37 = vld [vmem:[%s3009_s8 + $0x10] sm:$0xff]  ;;  %v2137_v0 = vld [vmem:[%s3012_s11] ss:$0 sm:$0xff] }
 0x4b9   : > { %v2464_v2 = vpop.eup %2463 }
 0x4ba   : > { %1208 = vst.msk [vmem:[%s2812_s16 + $0x30] sm:$0xff] %vm1113_vm3, %v1199_v1  ;;  %2315 = vmatprep.mubr.msk.f32.mxu1 %vm1113_vm3, %v1199_v1  ;;  %v1197_v3 = vmul.f32 %v2464_v2, %v2793_v35  ;;  %v1663_v35 = vld [vmem:[%s3009_s8 + $0x20] sm:$0xff] }
 0x4bb   : > { %v2466_v4 = vpop.eup %2465  ;;  %2316 = vmatmul.mubr.msk.f32.vlgmr.msra.gmra.mxu1 %vm1113_vm3, %v1201_v63  ;;  %v1854_v63 = vld [vmem:[%s3013_s12] sm:$0xff] }
 0x4bc   : > { %v1195_v5 = vmul.f32 %v2466_v4, %v2798_v39  ;;  %1207 = vst.msk [vmem:[%s2812_s16 + $0x28] sm:$0xff] %vm1113_vm3, %v1197_v3  ;;  %2319 = vmatpush3.msra.mxu1 %v1568_v10  ;;  %v1659_v39 = vld [vmem:[%s3009_s8] sm:$0xff] }
 0x4bd   : > { %2320 = vmatprep.subr.mxu1 %v1567_v11 }
 0x4be   : > { %1206 = vst.msk [vmem:[%s2812_s16 + $0x20] sm:$0xff] %vm1113_vm3, %v1195_v5  ;;  %2308 = vmatprep.mubr.msk.f32.mxu0 %vm1113_vm3, %v1195_v5  ;;  %2321 = vmatpush3.msra.mxu1 %v1567_v11  ;;  %s2471_s16 = sshll.u32 %s2537_s22, 4  ;;  %s2472_s16 = int_to_ptr.vmem [resolvable:$false] %s2471_s16 }
 0x4bf   : > { %2309 = vmatmul.mubr.msk.f32.vlgmr.msra.gmra.mxu0 %vm1113_vm3, %v1197_v3  ;;  %2322 = vmatprep.subr.mxu1 %v1566_v12  ;;  %p2474_p0 = scmp.lt.s32.totalorder %s2946_s18, %s2472_s16 }
 0x4c0   : > { %2323 = vmatpush3.msra.mxu1 %v1566_v12  ;;  %2349 = vmatpush3.msra.mxu0 %v1763_v47 }
 0x4c1   : > { %2324 = vmatprep.subr.mxu1 %v1565_v13  ;;  %2350 = vmatprep.subr.mxu0 %v1762_v48 }
 0x4c2   : > { %2325 = vmatpush3.msra.mxu1 %v1565_v13  ;;  %2351 = vmatpush3.msra.mxu0 %v1762_v48 }
 0x4c3   : > { %2329 = vmatprep.subr.mxu1 %v1666_v14  ;;  %2352 = vmatprep.subr.mxu0 %v1761_v49 }
 0x4c4   : > { %2353 = vmatpush3.msra.mxu0 %v1761_v49 }
 0x4c5   : > { %2354 = vmatprep.subr.mxu0 %v1760_v50 }
 0x4c6   : > { %2355 = vmatpush3.msra.mxu0 %v1760_v50 }
 0x4c7   : > { %2359 = vmatprep.subr.mxu0 %v1861_v51 }
 0x51b   : > { %v2296_v6 = vpop.f32.mrf.mxu1 }
 0x51d   : > { %v1282_v7 = vpop.f32.mrf.mxu1 }
 0x571   : > { %v2303_v8 = vpop.f32.mrf.mxu1 }
 0x572   : > { %1538 = vrot.lane.b32.xlu1 %v2303_v8, %s3023_s24 }
 0x573   : > { %v1363_v9 = vpop.f32.mrf.mxu1 }
 0x574   : > { %1536 = vrot.lane.b32.xlu0 %v1363_v9, %s3023_s24  ;;  %s2473_s24 = scalar_lea.vmem %s2472_s16, 2048 }
 0x575   : > { %p2475_p1 = scmp.lt.s32.totalorder %s2473_s24, %s2467_s27 }
 0x577   : > { %p2476_p2 = por %p2475_p1, %p2474_p0 }
 0x579   : > { %p2477_p3 = pnand %p2476_p2, %p2470_p13 }
 0x57b   : > { %v2317_v17 = vpop.f32.mrf.mxu1 }
 0x57d   : > { %v1525_v20 = vpop.f32.mrf.mxu1 }
 0x57f   : > { %v2310_v15 = vpop.f32.mrf.mxu0 }
 0x580   : > { %1546 = vrot.lane.b32.xlu1 %v2310_v15, %s2535_s29 }
 0x581   : > { %v1444_v18 = vpop.f32.mrf.mxu0 }
 0x582   : > { %1544 = vrot.lane.b32.xlu0 %v1444_v18, %s2535_s29 }
 0x584   : > { %1554 = vrot.lane.b32.xlu1 %v2317_v17, %s2536_s23 }
 0x586   : > { %1552 = vrot.lane.b32.xlu0 %v1525_v20, %s2536_s23 }
 0x5e4   : > { %v1539_v21 = vpop.permute.xlu1 %1538 }
 0x5e5   : > { %v1559_v27 = vsel %vm772_vm2, %v2296_v6, %v1539_v21 }
 0x5e6   : > { %v1537_v22 = vpop.permute.xlu0 %1536 }
 0x5e7   : > { %v1558_v25 = vsel %vm772_vm2, %v1282_v7, %v1537_v22 }
 0x5f2   : > { %v1547_v23 = vpop.permute.xlu1 %1546 }
 0x5f3   : > { %v1561_v30 = vsel %vm1113_vm3, %v1559_v27, %v1547_v23 }
 0x5f4   : > { %v1545_v24 = vpop.permute.xlu0 %1544 }
 0x5f5   : > { %v1560_v28 = vsel %vm1113_vm3, %v1558_v25, %v1545_v24 }
 0x5f6   : > { %v1555_v26 = vpop.permute.xlu1 %1554 }
 0x5f7   : > { %v1564_v32 = vsel %vm1562_vm4, %v1561_v30, %v1555_v26 }
 0x5f8   : > { %v1553_v29 = vpop.permute.xlu0 %1552 }
 0x5f9   : > { %v1563_v31 = vsel %vm1562_vm4, %v1560_v28, %v1553_v29 }
 0x5fa   : > { %2326 = vmatprep.mubr.msk.f32.mxu1 %vm658_vm1, %v1563_v31 }
 0x5fb   : > { %2327 = vmatmul.mubr.msk.f32.vlgmr.msra.gmra.mxu1 %vm658_vm1, %v1564_v32 }
 0x5fc   : > { %2330 = vmatpush3.msra.mxu1 %v1666_v14 }
 0x5fd   : > { %2331 = vmatprep.subr.mxu1 %v1665_v33 }
 0x5fe   : > { %2332 = vmatpush3.msra.mxu1 %v1665_v33 }
 0x5ff   : > { %2333 = vmatprep.subr.mxu1 %v1664_v34 }
 0x600   : > { %2334 = vmatpush3.msra.mxu1 %v1664_v34 }
 0x601   : > { %2335 = vmatprep.subr.mxu1 %v1663_v35 }
 0x602   : > { %2336 = vmatpush3.msra.mxu1 %v1663_v35 }
 0x603   : > { %2337 = vmatprep.subr.mxu1 %v1662_v36 }
 0x604   : > { %2338 = vmatpush3.msra.mxu1 %v1662_v36 }
 0x605   : > { %2339 = vmatprep.subr.mxu1 %v1661_v37 }
 0x606   : > { %2340 = vmatpush3.msra.mxu1 %v1661_v37 }
 0x607   : > { %2341 = vmatprep.subr.mxu1 %v1660_v38 }
 0x608   : > { %2342 = vmatpush3.msra.mxu1 %v1660_v38 }
 0x609   : > { %2343 = vmatprep.subr.mxu1 %v1659_v39 }
 0x60a   : > { %2344 = vmatpush3.msra.mxu1 %v1659_v39 }
 0x6bb   : > { %v2328_v41 = vpop.f32.mrf.mxu1 }
 0x6bc   : > { %v1654_v42 = vadd.f32 %v2328_v41, %v2131_v40 }
 0x6bd   : > { %v1648_v43 = vpop.f32.mrf.mxu1 }
 0x6be   : > { %v1649_v44 = vadd.f32 %v2131_v40, %v1648_v43  ;;  %v1658_v46 = vmax.f32 %v1654_v42, 0.0 }
 0x6c0   : > { %v1657_v45 = vmax.f32 %v1649_v44, 0.0 }
 0x6c2   : > { %2345 = vmatprep.mubr.msk.f32.mxu1 %vm1667_vm5, %v1657_v45 }
 0x6c3   : > { %2346 = vmatmul.mubr.msk.f32.vlgmr.msra.gmra.mxu1 %vm1667_vm5, %v1658_v46 }
 0x783   : > { %v2347_v52 = vpop.f32.mrf.mxu1 }
 0x784   : > { %v1750_v53 = vadd.f32 %v2347_v52, %v2718_v19  ;;  %v1859_v19 = vld [vmem:[%s3013_s12 + $0x28] sm:$0xff] }
 0x785   : > { %v1740_v54 = vpop.f32.mrf.mxu1 }
 0x786   : > { %v1749_v56 = vadd.f32 %v1740_v54, %v2714_v16  ;;  %v1759_v58 = vadd.f32 %v2136_v55, %v1750_v53  ;;  %v1858_v16 = vld [vmem:[%s3013_s12 + $0x20] sm:$0xff] }
 0x788   : > { %v1758_v57 = vadd.f32 %v2136_v55, %v1749_v56 }
 0x78a   : > { %2356 = vmatprep.mubr.msk.f32.mxu0 %vm658_vm1, %v1758_v57 }
 0x78b   : > { %2357 = vmatmul.mubr.msk.f32.vlgmr.msra.gmra.mxu0 %vm658_vm1, %v1759_v58 }
 0x78c   : > { %2360 = vmatpush3.msra.mxu0 %v1861_v51 }
 0x78d   : > { %2361 = vmatprep.subr.mxu0 %v1860_v59 }
 0x78e   : > { %2362 = vmatpush3.msra.mxu0 %v1860_v59 }
 0x78f   : > { %2363 = vmatprep.subr.mxu0 %v1859_v19 }
 0x790   : > { %2364 = vmatpush3.msra.mxu0 %v1859_v19 }
 0x791   : > { %2365 = vmatprep.subr.mxu0 %v1858_v16 }
 0x792   : > { %2366 = vmatpush3.msra.mxu0 %v1858_v16 }
 0x793   : > { %2367 = vmatprep.subr.mxu0 %v1857_v60 }
 0x794   : > { %2368 = vmatpush3.msra.mxu0 %v1857_v60 }
 0x795   : > { %2369 = vmatprep.subr.mxu0 %v1856_v61 }
 0x796   : > { %2370 = vmatpush3.msra.mxu0 %v1856_v61 }
 0x797   : > { %2371 = vmatprep.subr.mxu0 %v1855_v62 }
 0x798   : > { %2372 = vmatpush3.msra.mxu0 %v1855_v62 }
 0x799   : > { %2373 = vmatprep.subr.mxu0 %v1854_v63 }
 0x79a   : > { %2374 = vmatpush3.msra.mxu0 %v1854_v63 }
 0x84b   : > { %v2358_v1 = vpop.f32.mrf.mxu0 }
 0x84c   : > { %v1849_v2 = vadd.f32 %v2358_v1, %v2137_v0 }
 0x84d   : > { %v1843_v3 = vpop.f32.mrf.mxu0 }
 0x84e   : > { %v1844_v4 = vadd.f32 %v2137_v0, %v1843_v3  ;;  %v1853_v6 = vmax.f32 %v1849_v2, 0.0 }
 0x850   : > { %v1852_v5 = vmax.f32 %v1844_v4, 0.0 }
 0x852   : > { %2375 = vmatprep.mubr.msk.f32.mxu0 %vm1667_vm5, %v1852_v5 }
 0x853   : > { %2376 = vmatmul.mubr.msk.f32.vlgmr.msra.gmra.mxu0 %vm1667_vm5, %v1853_v6 }
 0x854   : > { %2480 = shalt.err (!%p2477_p3)
}
 0x855   : > { %s2481_s17 = scalar_lea.hbm %s2944_s20, 1024  ;;  %s2485_s26 = scalar_lea.hbm %s3016_s15, 2048 }
 0x856   : > { %p2482_p4 = scmp.ne.s32.totalorder %s2944_s20, %s2481_s17  ;;  %p2486_p9 = scmp.lt.s32.totalorder %s2944_s20, %s3016_s15 }
 0x857   : > { %p2487_p10 = scmp.lt.s32.totalorder %s2485_s26, %s2481_s17 }
 0x858   : > { %p2483_p7 = pnand %p2482_p4, %p2657_p5 }
 0x859   : > { %p2488_p11 = por %p2487_p10, %p2486_p9 }
 0x85a   : > { %p2484_p8 = pneg %p2483_p7 }
 0x85c   : > { %p2489_p12 = pnand %p2488_p11, %p2484_p8 }
 0x85e   : > { %2492 = shalt.err (!%p2489_p12)
}
 0x85f   : > { %s2538_s24 = smov 128   ;;  %s3034_s27 = smov 8   ;;  %v1952_v7 = vlaneseq  ;;  %v2140_v10 = vld [vmem:[%s3014_s13] ss:$0 sm:$0xff]  ;;  %vm1959_vm7 = vcmask 97280  }
 0x860   : > { %2378 = dma.vmem_to_hbm [thread:$0]  (%p2657_p5), %s2946_s18, 1024, %s2944_s20, %s2950_s30, %s2538_s24, %s2538_s24, %s3034_s27  }
 0x861   : > { %s2149_s16 = sshll.u32 %s2675_s25, 4  ;;  %v1953_v8 = vand.u32 127, %v1952_v7 }
 0x862   : > { %s520_s0 = scalar_lea.vmem %s3002_s1, %s2149_s16  ;;  %s525_s18 = scalar_lea.vmem %s3015_s14, %s2149_s16 }
 0x863   : > { %v1951_v9 = vld [vmem:[%s520_s0 + $0x8] sm:$0xff]  ;;  %vm1954_vm6 = vcmp.ge.s32.totalorder %v1953_v8, 2  ;;  %v1950_v11 = vld [vmem:[%s520_s0] sm:$0xff] }
 0x864   : > { %v1956_v13 = vsel %vm1954_vm6, %v1951_v9, 0.0  ;;  %v1955_v17 = vsel %vm1954_vm6, %v1950_v11, 0.0 }
 0x913   : > { %v2377_v12 = vpop.f32.mrf.mxu0 }
 0x914   : > { %v1947_v14 = vadd.f32 %v2377_v12, %v2140_v10 }
 0x915   : > { %v1941_v15 = vpop.f32.mrf.mxu0 }
 0x916   : > { %v1958_v18 = vadd.f32 %v1956_v13, %v1947_v14  ;;  %v1942_v20 = vadd.f32 %v2140_v10, %v1941_v15 }
 0x918   : > { %1961 = vst.msk [vmem:[%s525_s18 + $0x8] sm:$0xff] %vm1959_vm7, %v1958_v18  ;;  %v1957_v21 = vadd.f32 %v1955_v17, %v1942_v20 }
 0x91a   : > { %1960 = vst.msk [vmem:[%s525_s18] sm:$0xff] %vm1959_vm7, %v1957_v21 }
 0x91b PF: > { %s3035_s25 = sld [smem:[#allocation5_spill]]  ;;  %p2384_p5 = scmp.ge.s32.totalorder %s2527_s21, 2 }
 0x91d   : > { %p2381_p13 = pnand %p2384_p5, %p2661_p6 }
 0x91f   : > { %p2382_p0 = pneg %p2381_p13 }
 0x921   : > { %s2007_s30 = sand.u32 1, %s3035_s25  }
 0x922   : > { %s2008_s24 = scalar_lea.sflag [#allocation3], %s2007_s30 }
 0x923   : > { %2510 = dma.done.wait (%p2382_p0), %s2008_s24, 1024  }
 0x924   : > { %2512 = vsyncadd (%p2382_p0), %s2008_s24, 4294966272  ;;  %s3037_s21 = sld [smem:[#allocation7_spill]]  ;;  %s3040_s18 = smov %s2519_s19 }
 0x925   : > { %s3038_s27 = sld [smem:[#allocation6_spill]] }
 0x926   : > { %s3039_s20 = sld [smem:[#allocation8_spill]] }
 0x92a   : > { %p26_p1 = scmp.ge.s32.totalorder %s3037_s21, 4  }
 0x92b   : > { %s3041_s19 = smov %s3038_s27 }
 0x92c   :  { %28 = sbr.rel (!%p26_p1) target bundleno = 5 (0x5), region = 126 }
 0x931   :  { %2013 = vsyncpa [#allocation3], 1 }
 0x932   :  { %2015 = vsyncpa [#allocation3 + $0x1], 1 }

</bundles_post_ra>
